<compile_context>
chip_gen: v7x
topology: tpu7x:2x2x1
jax: 0.10.0
libtpu: 0.0.40
codegen_flags: <defaults>
</compile_context>

<pallas_src>
import jax
import jax.numpy as jnp
from jax.experimental import pallas as pl
from jax.experimental.pallas import tpu as pltpu


def _round_up(x: int, n: int) -> int:
    return ((x + n - 1) // n) * n


def _sublane_pack(dtype) -> int:
    """Rows per native sublane group: f32 -> 8, bf16 -> 16, int8/fp8 -> 32."""
    return max(8, 32 // jnp.dtype(dtype).itemsize)


def _embed_kernel(ids_ref, table_ref, out_ref):
    """Lane-dense one-hot gather.

    ids_ref:   (TG, P)     int32   P packed atom ids per 128-lane output row
    table_ref: (P*Vp, PD)  float   block-diagonal embedding table
    out_ref:   (TG, PD)    float   packed embeddings (PD == 128 when P > 1)
    """
    ids = ids_ref[...]
    tg, p = ids.shape
    vp = table_ref.shape[0] // p
    pd = table_ref.shape[1]

    col = jax.lax.broadcasted_iota(jnp.int32, (tg, vp), 1)            # (TG, Vp)
    acc = jnp.zeros((tg, pd), jnp.float32)
    # Per-slot one-hot + matmul (unrolled; P <= 128//D is small).  Keeps the
    # live one-hot at (TG, Vp) instead of a (TG, P*Vp) concat, removes the
    # concat relayout, and lets the scheduler interleave VPU compares with MXU
    # pushes; the block-diagonal table already routes slot j's embedding into
    # lanes [j*D, (j+1)*D), so a plain f32 accumulate is exact.
    for j in range(p):
        onehot = (col == ids[:, j:j + 1]).astype(table_ref.dtype)     # (TG, Vp)
        acc = acc + jnp.dot(
            onehot,
            table_ref[pl.ds(j * vp, vp), :],
            preferred_element_type=jnp.float32,
        )
    out_ref[...] = acc.astype(out_ref.dtype)


def make_atom_embedding(table, *, tm: int = 1024):
    """Returns apply(atom_numbers) == AtomEmbedding.forward for this table.

    The block-diagonal table is prepared ONCE here (not per forward call).
    """
    v, d = table.shape
    dtype = table.dtype
    itemsize = jnp.dtype(dtype).itemsize

    # Lane-packing factor: P rows of width D share one 128-lane output row.
    if d < 128 and 128 % d == 0:
        p = 128 // d
    else:
        p = 1                    # D >= 128 (or awkward width): plain layout.
    pd = p * d

    # Pad vocab to a multiple of 128 (zero rows) so one-hot lanes / the MXU
    # contraction dim are aligned, then build the block-diagonal table once:
    #   bd[j*Vp + r, j*D + c] = table[r, c].
    vp = _round_up(max(v, 1), 128)
    padded_tbl = jnp.pad(table, ((0, vp - v), (0, 0)))
    bd = jnp.einsum("jk,rc->jrkc", jnp.eye(p, dtype=dtype), padded_tbl)
    bd = bd.reshape(p * vp, pd)
    table_bytes = bd.size * itemsize

    # Padded id rows map to a zero pad row when one exists, else to row 0;
    # either way those output rows are sliced off by the wrapper.
    pad_id = v if vp > v else 0

    # Dtype-aware row alignment: sublane packing (8/16/32) times the lane pack.
    row_align = _sublane_pack(dtype) * p

    def apply(atom_numbers):
        ids = atom_numbers.astype(jnp.int32)          # torch .long()
        if ids.ndim and ids.shape[-1] == 1:           # torch .squeeze(-1)
            ids = ids[..., 0]
        batch_shape = ids.shape
        flat = ids.reshape(-1)
        m = flat.shape[0]
        if m == 0:                                    # empty-input edge case
            return jnp.zeros((*batch_shape, d), dtype)

        # Row tile: as big as requested but clamped to the (padded) input, and
        # split into >= 2 parallel grid steps when affordable so both v7x
        # TensorCores get work (no-op on single-core v5e/v6e).
        m_min = _round_up(m, row_align)
        tm_req = _round_up(tm, row_align)
        n_steps = max(1, -(-m_min // tm_req))
        if n_steps < 2 and m_min >= 2 * row_align:
            n_steps = 2
        tm_eff = _round_up(-(-m_min // n_steps), row_align)
        mp = _round_up(m, tm_eff)
        grid = (mp // tm_eff,)
        tg = tm_eff // p

        flat = jnp.pad(flat, (0, mp - m), constant_values=pad_id)
        ids_packed = flat.reshape(mp // p, p)

        # VMEM budget: 2x pipelined (ids + out) tiles + 1x resident table
        # + one-hot / accumulator scratch + slack.
        ids_tile_b = tm_eff * 4
        out_tile_b = tg * pd * itemsize
        scratch_b = tg * vp * itemsize + tg * pd * 4
        needed = 2 * (ids_tile_b + out_tile_b) + table_bytes + scratch_b
        vmem_limit = int(min(max(needed + (8 << 20), 16 << 20), 64 << 20))

        cost = pl.CostEstimate(
            flops=int(2 * mp * vp * pd),
            transcendentals=0,
            bytes_accessed=int(mp * 4 + mp * d * itemsize + table_bytes),
        )

        def run(single_buffer_table: bool):
            # Table block index is constant -> DMA'd once; single-buffer it so
            # it costs 1x (not 2x) VMEM.
            table_spec = (
                pl.BlockSpec((p * vp, pd), lambda i: (0, 0),
                             pipeline_mode=pl.Buffered(1))
                if single_buffer_table else
                pl.BlockSpec((p * vp, pd), lambda i: (0, 0))
            )
            return pl.pallas_call(
                _embed_kernel,
                out_shape=jax.ShapeDtypeStruct((mp // p, pd), dtype),
                grid=grid,
                in_specs=[
                    pl.BlockSpec((tg, p), lambda i: (i, 0)),     # packed id tile
                    table_spec,                                  # resident table
                ],
                out_specs=pl.BlockSpec((tg, pd), lambda i: (i, 0)),  # lane-dense
                compiler_params=pltpu.CompilerParams(
                    dimension_semantics=("parallel",),
                    vmem_limit_bytes=vmem_limit,
                ),
                cost_estimate=cost,
            )(ids_packed, bd)

        try:
            out = run(True)
        except Exception:
            # Fallback for jax builds that reject Buffered(1) on this path.
            out = run(False)

        # (MP/P, P*D) row-major is bit-identical to (MP, D); unpack in wrapper.
        out = out.reshape(mp, d)[:m]
        return out.reshape(*batch_shape, d)

    return apply


def atom_embedding(atom_numbers, table, *, tm: int = 1024):
    """One-shot convenience wrapper; prefer make_atom_embedding to amortize
    the block-diagonal table construction across calls."""
    return make_atom_embedding(table, tm=tm)(atom_numbers)


if __name__ == "__main__":
    n_atom_types = 100
    embedding_dim = 32
    B, N = 2, 8

    key = jax.random.PRNGKey(0)
    k_ids, k_w = jax.random.split(key)

    # deterministic "parameters": nn.Embedding default init is N(0, 1)
    table = jax.random.normal(k_w, (n_atom_types, embedding_dim), jnp.float32)

    # atom_numbers with the trailing singleton dim that forward() squeezes
    atom_numbers = jax.random.randint(
        k_ids, (B, N, 1), minval=0, maxval=n_atom_types, dtype=jnp.int32
    )

    embed = make_atom_embedding(table)          # table prepared once
    out = jax.block_until_ready(embed(atom_numbers))

    ref = table[atom_numbers[..., 0]]
    assert out.shape == (B, N, embedding_dim)
    assert jnp.allclose(out, ref, atol=1e-6), "f32 mismatch vs reference gather"

    # bf16 fast path: native MXU rate, still an (effectively) exact gather.
    table_bf16 = table.astype(jnp.bfloat16)
    out_bf16 = jax.block_until_ready(make_atom_embedding(table_bf16)(atom_numbers))
    ref_bf16 = table_bf16[atom_numbers[..., 0]]
    assert out_bf16.dtype == jnp.bfloat16
    assert jnp.allclose(out_bf16.astype(jnp.float32),
                        ref_bf16.astype(jnp.float32), atol=1e-2), \
        "bf16 mismatch vs reference gather"

    print("KERNEL_OK")
</pallas_src>

<mosaic_0001>
module attributes {stable_mosaic.version = 11 : i64} {
  func.func @_embed_kernel(%arg0: i32, %arg1: memref<8x4xi32, #tpu.memory_space<vmem>>, %arg2: memref<512x128xf32, #tpu.memory_space<vmem>>, %arg3: memref<8x128xf32, #tpu.memory_space<vmem>>) attributes {dimension_semantics = [#tpu.dimension_semantics<parallel>], iteration_bounds = array<i64: 1>, scalar_prefetch = 0 : i64, scratch_operands = 0 : i64, tpu.core_type = #tpu.core_type<tc>, window_params = [{transform_indices = @transform_0, window_bounds = array<i64: 8, 4>}, {pipeline_mode = #tpu.pipeline_mode<synchronous>, transform_indices = @transform_1, window_bounds = array<i64: 512, 128>}, {transform_indices = @transform_2, window_bounds = array<i64: 8, 128>}]} {
    %c0 = arith.constant 0 : index
    %c0_0 = arith.constant 0 : index
    %0 = vector.load %arg1[%c0, %c0_0] : memref<8x4xi32, #tpu.memory_space<vmem>>, vector<8x4xi32>
    %1 = tpu.iota {dimensions = array<i32: 1>} : vector<8x128xi32>
    %cst = arith.constant 0.000000e+00 : f32
    %2 = vector.broadcast %cst : f32 to vector<8x128xf32>
    %3 = vector.extract_strided_slice %0 {offsets = [0, 0], sizes = [8, 1], strides = [1, 1]} : vector<8x4xi32> to vector<8x1xi32>
    %4 = vector.broadcast %3 : vector<8x1xi32> to vector<8x128xi32>
    %5 = arith.cmpi eq, %1, %4 : vector<8x128xi32>
    %6 = arith.extui %5 : vector<8x128xi1> to vector<8x128xi32>
    %7 = arith.sitofp %6 : vector<8x128xi32> to vector<8x128xf32>
    %c0_1 = arith.constant 0 : index
    %c0_2 = arith.constant 0 : index
    %8 = vector.load %arg2[%c0_1, %c0_2] : memref<512x128xf32, #tpu.memory_space<vmem>>, vector<128x128xf32>
    %cst_3 = arith.constant dense<0.000000e+00> : vector<8x128xf32>
    %9 = tpu.matmul %7, %8, %cst_3 {dimension_numbers = #tpu.dot_dimension_numbers<[1], [0], [0], [1], [0, 0, 1, 1], [], []>} : vector<8x128xf32>, vector<128x128xf32>, vector<8x128xf32> -> vector<8x128xf32>
    %10 = arith.addf %2, %9 : vector<8x128xf32>
    %11 = vector.extract_strided_slice %0 {offsets = [0, 1], sizes = [8, 1], strides = [1, 1]} : vector<8x4xi32> to vector<8x1xi32>
    %12 = vector.broadcast %11 : vector<8x1xi32> to vector<8x128xi32>
    %13 = arith.cmpi eq, %1, %12 : vector<8x128xi32>
    %14 = arith.extui %13 : vector<8x128xi1> to vector<8x128xi32>
    %15 = arith.sitofp %14 : vector<8x128xi32> to vector<8x128xf32>
    %c128 = arith.constant 128 : index
    %c0_4 = arith.constant 0 : index
    %16 = vector.load %arg2[%c128, %c0_4] : memref<512x128xf32, #tpu.memory_space<vmem>>, vector<128x128xf32>
    %cst_5 = arith.constant dense<0.000000e+00> : vector<8x128xf32>
    %17 = tpu.matmul %15, %16, %cst_5 {dimension_numbers = #tpu.dot_dimension_numbers<[1], [0], [0], [1], [0, 0, 1, 1], [], []>} : vector<8x128xf32>, vector<128x128xf32>, vector<8x128xf32> -> vector<8x128xf32>
    %18 = arith.addf %10, %17 : vector<8x128xf32>
    %19 = vector.extract_strided_slice %0 {offsets = [0, 2], sizes = [8, 1], strides = [1, 1]} : vector<8x4xi32> to vector<8x1xi32>
    %20 = vector.broadcast %19 : vector<8x1xi32> to vector<8x128xi32>
    %21 = arith.cmpi eq, %1, %20 : vector<8x128xi32>
    %22 = arith.extui %21 : vector<8x128xi1> to vector<8x128xi32>
    %23 = arith.sitofp %22 : vector<8x128xi32> to vector<8x128xf32>
    %c256 = arith.constant 256 : index
    %c0_6 = arith.constant 0 : index
    %24 = vector.load %arg2[%c256, %c0_6] : memref<512x128xf32, #tpu.memory_space<vmem>>, vector<128x128xf32>
    %cst_7 = arith.constant dense<0.000000e+00> : vector<8x128xf32>
    %25 = tpu.matmul %23, %24, %cst_7 {dimension_numbers = #tpu.dot_dimension_numbers<[1], [0], [0], [1], [0, 0, 1, 1], [], []>} : vector<8x128xf32>, vector<128x128xf32>, vector<8x128xf32> -> vector<8x128xf32>
    %26 = arith.addf %18, %25 : vector<8x128xf32>
    %27 = vector.extract_strided_slice %0 {offsets = [0, 3], sizes = [8, 1], strides = [1, 1]} : vector<8x4xi32> to vector<8x1xi32>
    %28 = vector.broadcast %27 : vector<8x1xi32> to vector<8x128xi32>
    %29 = arith.cmpi eq, %1, %28 : vector<8x128xi32>
    %30 = arith.extui %29 : vector<8x128xi1> to vector<8x128xi32>
    %31 = arith.sitofp %30 : vector<8x128xi32> to vector<8x128xf32>
    %c384 = arith.constant 384 : index
    %c0_8 = arith.constant 0 : index
    %32 = vector.load %arg2[%c384, %c0_8] : memref<512x128xf32, #tpu.memory_space<vmem>>, vector<128x128xf32>
    %cst_9 = arith.constant dense<0.000000e+00> : vector<8x128xf32>
    %33 = tpu.matmul %31, %32, %cst_9 {dimension_numbers = #tpu.dot_dimension_numbers<[1], [0], [0], [1], [0, 0, 1, 1], [], []>} : vector<8x128xf32>, vector<128x128xf32>, vector<8x128xf32> -> vector<8x128xf32>
    %34 = arith.addf %26, %33 : vector<8x128xf32>
    %c0_10 = arith.constant 0 : index
    %c0_11 = arith.constant 0 : index
    %35 = vector.load %arg3[%c0_10, %c0_11] : memref<8x128xf32, #tpu.memory_space<vmem>>, vector<8x128xf32>
    tpu.vector_store %arg3[%c0_10, %c0_11], %34 {strides = array<i32>} : memref<8x128xf32, #tpu.memory_space<vmem>>, vector<8x128xf32>,
    return
  }
  func.func @transform_0(%arg0: i32) -> (i32, i32) {
    %c0_i32 = arith.constant 0 : i32
    %c0_i32_0 = arith.constant 0 : i32
    return %arg0, %c0_i32 : i32, i32
  }
  func.func @transform_1(%arg0: i32) -> (i32, i32) {
    %c0_i32 = arith.constant 0 : i32
    %c0_i32_0 = arith.constant 0 : i32
    %c0_i32_1 = arith.constant 0 : i32
    return %c0_i32, %c0_i32_0 : i32, i32
  }
  func.func @transform_2(%arg0: i32) -> (i32, i32) {
    %c0_i32 = arith.constant 0 : i32
    %c0_i32_0 = arith.constant 0 : i32
    return %arg0, %c0_i32 : i32, i32
  }
}

module attributes {stable_mosaic.version = 11 : i64} {
  func.func @_embed_kernel(%arg0: i32, %arg1: memref<8x4xi32, #tpu.memory_space<vmem>>, %arg2: memref<512x128xf32, #tpu.memory_space<vmem>>, %arg3: memref<8x128xf32, #tpu.memory_space<vmem>>) attributes {dimension_semantics = [#tpu.dimension_semantics<parallel>], iteration_bounds = array<i64: 1>, scalar_prefetch = 0 : i64, scratch_operands = 0 : i64, tpu.core_type = #tpu.core_type<tc>, window_params = [{transform_indices = @transform_0, window_bounds = array<i64: 8, 4>}, {pipeline_mode = #tpu.pipeline_mode<synchronous>, transform_indices = @transform_1, window_bounds = array<i64: 512, 128>}, {transform_indices = @transform_2, window_bounds = array<i64: 8, 128>}]} {
    %c0 = arith.constant 0 : index
    %c0_0 = arith.constant 0 : index
    %0 = vector.load %arg1[%c0, %c0_0] : memref<8x4xi32, #tpu.memory_space<vmem>>, vector<8x4xi32>
    %1 = tpu.iota {dimensions = array<i32: 1>} : vector<8x128xi32>
    %cst = arith.constant 0.000000e+00 : f32
    %2 = vector.broadcast %cst : f32 to vector<8x128xf32>
    %3 = vector.extract_strided_slice %0 {offsets = [0, 0], sizes = [8, 1], strides = [1, 1]} : vector<8x4xi32> to vector<8x1xi32>
    %4 = vector.broadcast %3 : vector<8x1xi32> to vector<8x128xi32>
    %5 = arith.cmpi eq, %1, %4 : vector<8x128xi32>
    %6 = arith.extui %5 : vector<8x128xi1> to vector<8x128xi32>
    %7 = arith.sitofp %6 : vector<8x128xi32> to vector<8x128xf32>
    %c0_1 = arith.constant 0 : index
    %c0_2 = arith.constant 0 : index
    %8 = vector.load %arg2[%c0_1, %c0_2] : memref<512x128xf32, #tpu.memory_space<vmem>>, vector<128x128xf32>
    %cst_3 = arith.constant dense<0.000000e+00> : vector<8x128xf32>
    %9 = tpu.matmul %7, %8, %cst_3 {dimension_numbers = #tpu.dot_dimension_numbers<[1], [0], [0], [1], [0, 0, 1, 1], [], []>} : vector<8x128xf32>, vector<128x128xf32>, vector<8x128xf32> -> vector<8x128xf32>
    %10 = arith.addf %2, %9 : vector<8x128xf32>
    %11 = vector.extract_strided_slice %0 {offsets = [0, 1], sizes = [8, 1], strides = [1, 1]} : vector<8x4xi32> to vector<8x1xi32>
    %12 = vector.broadcast %11 : vector<8x1xi32> to vector<8x128xi32>
    %13 = arith.cmpi eq, %1, %12 : vector<8x128xi32>
    %14 = arith.extui %13 : vector<8x128xi1> to vector<8x128xi32>
    %15 = arith.sitofp %14 : vector<8x128xi32> to vector<8x128xf32>
    %c128 = arith.constant 128 : index
    %c0_4 = arith.constant 0 : index
    %16 = vector.load %arg2[%c128, %c0_4] : memref<512x128xf32, #tpu.memory_space<vmem>>, vector<128x128xf32>
    %cst_5 = arith.constant dense<0.000000e+00> : vector<8x128xf32>
    %17 = tpu.matmul %15, %16, %cst_5 {dimension_numbers = #tpu.dot_dimension_numbers<[1], [0], [0], [1], [0, 0, 1, 1], [], []>} : vector<8x128xf32>, vector<128x128xf32>, vector<8x128xf32> -> vector<8x128xf32>
    %18 = arith.addf %10, %17 : vector<8x128xf32>
    %19 = vector.extract_strided_slice %0 {offsets = [0, 2], sizes = [8, 1], strides = [1, 1]} : vector<8x4xi32> to vector<8x1xi32>
    %20 = vector.broadcast %19 : vector<8x1xi32> to vector<8x128xi32>
    %21 = arith.cmpi eq, %1, %20 : vector<8x128xi32>
    %22 = arith.extui %21 : vector<8x128xi1> to vector<8x128xi32>
    %23 = arith.sitofp %22 : vector<8x128xi32> to vector<8x128xf32>
    %c256 = arith.constant 256 : index
    %c0_6 = arith.constant 0 : index
    %24 = vector.load %arg2[%c256, %c0_6] : memref<512x128xf32, #tpu.memory_space<vmem>>, vector<128x128xf32>
    %cst_7 = arith.constant dense<0.000000e+00> : vector<8x128xf32>
    %25 = tpu.matmul %23, %24, %cst_7 {dimension_numbers = #tpu.dot_dimension_numbers<[1], [0], [0], [1], [0, 0, 1, 1], [], []>} : vector<8x128xf32>, vector<128x128xf32>, vector<8x128xf32> -> vector<8x128xf32>
    %26 = arith.addf %18, %25 : vector<8x128xf32>
    %27 = vector.extract_strided_slice %0 {offsets = [0, 3], sizes = [8, 1], strides = [1, 1]} : vector<8x4xi32> to vector<8x1xi32>
    %28 = vector.broadcast %27 : vector<8x1xi32> to vector<8x128xi32>
    %29 = arith.cmpi eq, %1, %28 : vector<8x128xi32>
    %30 = arith.extui %29 : vector<8x128xi1> to vector<8x128xi32>
    %31 = arith.sitofp %30 : vector<8x128xi32> to vector<8x128xf32>
    %c384 = arith.constant 384 : index
    %c0_8 = arith.constant 0 : index
    %32 = vector.load %arg2[%c384, %c0_8] : memref<512x128xf32, #tpu.memory_space<vmem>>, vector<128x128xf32>
    %cst_9 = arith.constant dense<0.000000e+00> : vector<8x128xf32>
    %33 = tpu.matmul %31, %32, %cst_9 {dimension_numbers = #tpu.dot_dimension_numbers<[1], [0], [0], [1], [0, 0, 1, 1], [], []>} : vector<8x128xf32>, vector<128x128xf32>, vector<8x128xf32> -> vector<8x128xf32>
    %34 = arith.addf %26, %33 : vector<8x128xf32>
    %c0_10 = arith.constant 0 : index
    %c0_11 = arith.constant 0 : index
    %35 = vector.load %arg3[%c0_10, %c0_11] : memref<8x128xf32, #tpu.memory_space<vmem>>, vector<8x128xf32>
    tpu.vector_store %arg3[%c0_10, %c0_11], %34 {strides = array<i32>} : memref<8x128xf32, #tpu.memory_space<vmem>>, vector<8x128xf32>,
    return
  }
  func.func @transform_0(%arg0: i32) -> (i32, i32) {
    %c0_i32 = arith.constant 0 : i32
    %c0_i32_0 = arith.constant 0 : i32
    return %arg0, %c0_i32 : i32, i32
  }
  func.func @transform_1(%arg0: i32) -> (i32, i32) {
    %c0_i32 = arith.constant 0 : i32
    %c0_i32_0 = arith.constant 0 : i32
    %c0_i32_1 = arith.constant 0 : i32
    return %c0_i32, %c0_i32_0 : i32, i32
  }
  func.func @transform_2(%arg0: i32) -> (i32, i32) {
    %c0_i32 = arith.constant 0 : i32
    %c0_i32_0 = arith.constant 0 : i32
    return %arg0, %c0_i32 : i32, i32
  }
}

</mosaic_0001>

<bundles_post_ra>
// kernel: tpu_custom_call.1
= control target key start
LH: loop header
LB: loop body
LE: loop exit
PB: predicated region body
PF: predicated region fallthrough
CT: control target
= control target key end

     0   :  { %7 = vsyncpa [#allocation3], 0  ;;  %s901_s0 = inlined_call_operand.vmem [shape: s32[8,4], index: 0, kind: input, shape index: {}]   ;;  %s902_s1 = inlined_call_operand.hbm [shape: f32[512,128], index: 1, kind: input, shape index: {}]   ;;  %s903_s2 = inlined_call_operand.hbm [shape: f32[8,128], index: 2, kind: output, shape index: {}]  }
   0x1   :  { %8 = vsyncpa [#allocation4], 0  ;;  %s797_s9 = smov [#allocation2]   ;;  %s749_s13 = scalar_lea.hbm %s902_s1, 8192 }
   0x2   :  { %s16_s10 = sshll.u32 %s797_s9, 4  ;;  %p750_p0 = scmp.ne.s32.totalorder %s902_s1, %s749_s13  ;;  %s17_s10 = int_to_ptr.vmem [resolvable:$true] %s16_s10 }
   0x3   :  { %p753_p1 = scmp.lt.u32.totalorder %s749_s13, %s902_s1 }
   0x5   :  { %p755_p2 = pnand %p753_p1, %p750_p0 }
   0x7   :  { %758 = shalt.err (!%p755_p2)
}
   0x8   :  { %s759_s18 = scalar_lea.vmem %s17_s10, 8192  ;;  %p764_p4 = scmp.lt.s32.totalorder %s17_s10, %s17_s10 }
   0x9   :  { %p760_p3 = scmp.ne.s32.totalorder %s17_s10, %s759_s18  ;;  %p765_p5 = scmp.lt.s32.totalorder %s759_s18, %s759_s18 }
   0xb   :  { %p766_p6 = por %p765_p5, %p764_p4 }
   0xd   :  { %p767_p7 = pnand %p766_p6, %p760_p3 }
   0xf   :  { %770 = shalt.err (!%p767_p7)
}
  0x10   :  { %s798_s19 = smov 128   ;;  %s799_s20 = smov 8  }
  0x11   :  { %22 = dma.hbm_to_vmem [thread:$0]  %s902_s1, 8192, %s17_s10, [#allocation3], %s798_s19, %s798_s19, %s799_s20  }
  0x12   :  { %793 = dma.done.wait [#allocation3], 8192  }
  0x13   :  { %794 = vsyncadd [#allocation3], 4294959104  ;;  %v800_v0 = vmov 1   ;;  %v801_v1 = vmov 0   ;;  %v802_v2 = vmov 0.0|0.0   ;;  %v26_v3 = vld [vmem:[%s901_s0] sm:$0xff]  ;;  %v27_v55 = vlaneseq }
  0x14   :  { %744 = vset.pattern.permute.xlu0 %v800_v0  ;;  %746 = vset.pattern.permute.xlu1 %v801_v1  ;;  %v57_v4 = vld [vmem:[#allocation2 + $0x80] sm:$0xff]  ;;  %v58_v5 = vld [vmem:[#allocation2 + $0x88] sm:$0xff]  ;;  %v59_v7 = vld [vmem:[#allocation2 + $0x90] sm:$0xff]  ;;  %vm803_vm0 = vmmov 0   ;;  %v804_v11 = vmov 0.0   ;;  %v805_v18 = vmov 2  }
  0x15   :  { %631 = vmatprep.subr.bf16.mxu1 %v802_v2  ;;  %679 = vmatprep.subr.bf16.mxu0 %v802_v2  ;;  %v632_v6 = vpack.c.bf16 %v58_v5, %v57_v4  ;;  %v60_v8 = vld [vmem:[#allocation2 + $0x98] sm:$0xff]  ;;  %v219_v9 = vld [vmem:[#allocation2 + $0x100] sm:$0xff]  ;;  %v220_v10 = vld [vmem:[#allocation2 + $0x108] sm:$0xff]  ;;  %v806_v19 = vmov 3   ;;  %v861_v58 = vand.u32 127, %v27_v55  ;;  %v807_v1 = vmov 1.0  }
  0x16   :  { %52 = vperm.xlu0 %744, %v26_v3   ;;  %30 = vperm.xlu1 %746, %v26_v3   ;;  %v635_v12 = vpack.c.bf16 %v60_v8, %v59_v7  ;;  %v680_v13 = vpack.c.bf16 %v220_v10, %v219_v9  ;;  %v61_v14 = vld [vmem:[#allocation2 + $0xa0] sm:$0xff]  ;;  %v62_v15 = vld [vmem:[#allocation2 + $0xa8] sm:$0xff]  ;;  %v221_v16 = vld [vmem:[#allocation2 + $0x110] sm:$0xff]  ;;  %s808_s0 = smov [#allocation5]  }
  0x17   :  { %523 = vmatprep.mubr.msk.f32.mxu1 %vm803_vm0, %v804_v11  ;;  %593 = vmatprep.mubr.msk.f32.mxu0 %vm803_vm0, %v804_v11  ;;  %v222_v17 = vld [vmem:[#allocation2 + $0x118] sm:$0xff]  ;;  %v638_v20 = vpack.c.bf16 %v62_v15, %v61_v14  ;;  %v63_v22 = vld [vmem:[#allocation2 + $0xb0] sm:$0xff]  ;;  %v223_v24 = vld [vmem:[#allocation2 + $0x120] sm:$0xff]  ;;  %s406_s1 = sshll.u32 %s808_s0, 4  ;;  %s407_s1 = int_to_ptr.vmem [resolvable:$true] %s406_s1 }
  0x18   :  { %633 = vmatpush3.bf16.msra.mxu1 %v632_v6  ;;  %681 = vmatpush3.bf16.msra.mxu0 %v680_v13  ;;  %v683_v21 = vpack.c.bf16 %v222_v17, %v221_v16  ;;  %v64_v23 = vld [vmem:[#allocation2 + $0xb8] sm:$0xff]  ;;  %v224_v25 = vld [vmem:[#allocation2 + $0x128] sm:$0xff]  ;;  %v65_v28 = vld [vmem:[#allocation2 + $0xc0] sm:$0xff]  ;;  %s771_s25 = scalar_lea.vmem %s407_s1, 128  ;;  %p776_p9 = scmp.lt.s32.totalorder %s407_s1, %s407_s1 }
  0x19   :  { %634 = vmatprep.subr.bf16.mxu1 %v802_v2  ;;  %682 = vmatprep.subr.bf16.mxu0 %v802_v2  ;;  %v641_v26 = vpack.c.bf16 %v64_v23, %v63_v22  ;;  %v686_v27 = vpack.c.bf16 %v224_v25, %v223_v24  ;;  %v66_v29 = vld [vmem:[#allocation2 + $0xc8] sm:$0xff]  ;;  %v225_v30 = vld [vmem:[#allocation2 + $0x130] sm:$0xff]  ;;  %v226_v31 = vld [vmem:[#allocation2 + $0x138] sm:$0xff]  ;;  %p772_p8 = scmp.ne.s32.totalorder %s407_s1, %s771_s25  ;;  %p777_p10 = scmp.lt.s32.totalorder %s771_s25, %s771_s25 }
  0x1a   :  { %745 = vset.pattern.permute.xlu0 %v805_v18  ;;  %747 = vset.pattern.permute.xlu1 %v806_v19  ;;  %v644_v32 = vpack.c.bf16 %v66_v29, %v65_v28  ;;  %v689_v33 = vpack.c.bf16 %v226_v31, %v225_v30  ;;  %v67_v34 = vld [vmem:[#allocation2 + $0xd0] sm:$0xff]  ;;  %v68_v35 = vld [vmem:[#allocation2 + $0xd8] sm:$0xff]  ;;  %v227_v36 = vld [vmem:[#allocation2 + $0x140] sm:$0xff] }
  0x1b   :  { %214 = vperm.xlu0 %745, %v26_v3   ;;  %307 = vperm.xlu1 %747, %v26_v3   ;;  %v228_v37 = vld [vmem:[#allocation2 + $0x148] sm:$0xff]  ;;  %v647_v38 = vpack.c.bf16 %v68_v35, %v67_v34  ;;  %v69_v40 = vld [vmem:[#allocation2 + $0xe0] sm:$0xff]  ;;  %v229_v42 = vld [vmem:[#allocation2 + $0x150] sm:$0xff]  ;;  %p778_p11 = por %p777_p10, %p776_p9 }
  0x1c   :  { %636 = vmatpush3.bf16.msra.mxu1 %v635_v12  ;;  %684 = vmatpush3.bf16.msra.mxu0 %v683_v21  ;;  %v692_v39 = vpack.c.bf16 %v228_v37, %v227_v36  ;;  %v70_v41 = vld [vmem:[#allocation2 + $0xe8] sm:$0xff]  ;;  %v230_v43 = vld [vmem:[#allocation2 + $0x158] sm:$0xff]  ;;  %v71_v46 = vld [vmem:[#allocation2 + $0xf0] sm:$0xff] }
  0x1d   :  { %637 = vmatprep.subr.bf16.mxu1 %v802_v2  ;;  %685 = vmatprep.subr.bf16.mxu0 %v802_v2  ;;  %v650_v44 = vpack.c.bf16 %v70_v41, %v69_v40  ;;  %v695_v45 = vpack.c.bf16 %v230_v43, %v229_v42  ;;  %v72_v47 = vld [vmem:[#allocation2 + $0xf8] sm:$0xff]  ;;  %v231_v48 = vld [vmem:[#allocation2 + $0x160] sm:$0xff]  ;;  %v232_v49 = vld [vmem:[#allocation2 + $0x168] sm:$0xff]  ;;  %p779_p12 = pnand %p778_p11, %p772_p8 }
  0x1e   :  { %v653_v50 = vpack.c.bf16 %v72_v47, %v71_v46  ;;  %v698_v51 = vpack.c.bf16 %v232_v49, %v231_v48  ;;  %v233_v52 = vld [vmem:[#allocation2 + $0x170] sm:$0xff]  ;;  %v234_v53 = vld [vmem:[#allocation2 + $0x178] sm:$0xff]  ;;  %v35_v56 = vld [vmem:[#allocation2] sm:$0xff] }
  0x1f   :  { %748 = vset.pattern.permute.xlu0 %v806_v19  ;;  %v701_v54 = vpack.c.bf16 %v234_v53, %v233_v52  ;;  %v36_v57 = vld [vmem:[#allocation2 + $0x8] sm:$0xff]  ;;  %v37_v61 = vld [vmem:[#allocation2 + $0x10] sm:$0xff]  ;;  %v38_v62 = vld [vmem:[#allocation2 + $0x18] sm:$0xff] }
  0x20   :  { %639 = vmatpush3.bf16.msra.mxu1 %v638_v20  ;;  %687 = vmatpush3.bf16.msra.mxu0 %v686_v27  ;;  %v656_v59 = vpack.c.bf16 %v36_v57, %v35_v56  ;;  %v312_v63 = vld [vmem:[#allocation2 + $0x180] sm:$0xff]  ;;  %v313_v0 = vld [vmem:[#allocation2 + $0x188] sm:$0xff]  ;;  %v659_v3 = vpack.c.bf16 %v38_v62, %v37_v61  ;;  %v314_v8 = vld [vmem:[#allocation2 + $0x190] sm:$0xff] }
  0x21   :  { %640 = vmatprep.subr.bf16.mxu1 %v802_v2  ;;  %688 = vmatprep.subr.bf16.mxu0 %v802_v2  ;;  %v704_v4 = vpack.c.bf16 %v313_v0, %v312_v63  ;;  %v39_v5 = vld [vmem:[#allocation2 + $0x20] sm:$0xff]  ;;  %v40_v6 = vld [vmem:[#allocation2 + $0x28] sm:$0xff]  ;;  %v315_v9 = vld [vmem:[#allocation2 + $0x198] sm:$0xff] }
  0x22   :  { %v662_v10 = vpack.c.bf16 %v40_v6, %v39_v5  ;;  %v707_v12 = vpack.c.bf16 %v315_v9, %v314_v8  ;;  %v41_v13 = vld [vmem:[#allocation2 + $0x30] sm:$0xff]  ;;  %v42_v14 = vld [vmem:[#allocation2 + $0x38] sm:$0xff]  ;;  %v316_v15 = vld [vmem:[#allocation2 + $0x1a0] sm:$0xff] }
  0x23   :  { %v317_v16 = vld [vmem:[#allocation2 + $0x1a8] sm:$0xff]  ;;  %v665_v17 = vpack.c.bf16 %v42_v14, %v41_v13  ;;  %v43_v19 = vld [vmem:[#allocation2 + $0x40] sm:$0xff]  ;;  %v318_v21 = vld [vmem:[#allocation2 + $0x1b0] sm:$0xff] }
  0x24   :  { %642 = vmatpush3.bf16.msra.mxu1 %v641_v26  ;;  %690 = vmatpush3.bf16.msra.mxu0 %v689_v33  ;;  %v710_v18 = vpack.c.bf16 %v317_v16, %v316_v15  ;;  %v44_v20 = vld [vmem:[#allocation2 + $0x48] sm:$0xff]  ;;  %v319_v22 = vld [vmem:[#allocation2 + $0x1b8] sm:$0xff]  ;;  %v45_v25 = vld [vmem:[#allocation2 + $0x50] sm:$0xff] }
  0x25   :  { %643 = vmatprep.subr.bf16.mxu1 %v802_v2  ;;  %691 = vmatprep.subr.bf16.mxu0 %v802_v2  ;;  %v668_v23 = vpack.c.bf16 %v44_v20, %v43_v19  ;;  %v713_v24 = vpack.c.bf16 %v319_v22, %v318_v21  ;;  %v320_v26 = vld [vmem:[#allocation2 + $0x1c0] sm:$0xff]  ;;  %v321_v27 = vld [vmem:[#allocation2 + $0x1c8] sm:$0xff]  ;;  %v323_v33 = vld [vmem:[#allocation2 + $0x1d8] sm:$0xff] }
  0x26   :  { %v716_v29 = vpack.c.bf16 %v321_v27, %v320_v26  ;;  %v47_v30 = vld [vmem:[#allocation2 + $0x60] sm:$0xff]  ;;  %v48_v31 = vld [vmem:[#allocation2 + $0x68] sm:$0xff]  ;;  %v49_v36 = vld [vmem:[#allocation2 + $0x70] sm:$0xff] }
  0x27   :  { %v674_v34 = vpack.c.bf16 %v48_v31, %v47_v30  ;;  %v50_v37 = vld [vmem:[#allocation2 + $0x78] sm:$0xff]  ;;  %v326_v43 = vld [vmem:[#allocation2 + $0x1f0] sm:$0xff] }
  0x28   :  { %645 = vmatpush3.bf16.msra.mxu1 %v644_v32  ;;  %693 = vmatpush3.bf16.msra.mxu0 %v692_v39  ;;  %v322_v32 = vld [vmem:[#allocation2 + $0x1d0] sm:$0xff]  ;;  %v325_v39 = vld [vmem:[#allocation2 + $0x1e8] sm:$0xff]  ;;  %v677_v40 = vpack.c.bf16 %v50_v37, %v49_v36 }
  0x29   :  { %646 = vmatprep.subr.bf16.mxu1 %v802_v2  ;;  %694 = vmatprep.subr.bf16.mxu0 %v802_v2  ;;  %v719_v35 = vpack.c.bf16 %v323_v33, %v322_v32 }
  0x2c   :  { %648 = vmatpush3.bf16.msra.mxu1 %v647_v38  ;;  %696 = vmatpush3.bf16.msra.mxu0 %v695_v45  ;;  %v324_v38 = vld [vmem:[#allocation2 + $0x1e0] sm:$0xff] }
  0x2d   :  { %649 = vmatprep.subr.bf16.mxu1 %v802_v2  ;;  %697 = vmatprep.subr.bf16.mxu0 %v802_v2  ;;  %v722_v42 = vpack.c.bf16 %v325_v39, %v324_v38 }
  0x30   :  { %651 = vmatpush3.bf16.msra.mxu1 %v650_v44  ;;  %699 = vmatpush3.bf16.msra.mxu0 %v698_v51  ;;  %v327_v44 = vld [vmem:[#allocation2 + $0x1f8] sm:$0xff] }
  0x31   :  { %652 = vmatprep.subr.bf16.mxu1 %v802_v2  ;;  %700 = vmatprep.subr.bf16.mxu0 %v802_v2  ;;  %v725_v45 = vpack.c.bf16 %v327_v44, %v326_v43 }
  0x34   :  { %654 = vmatpush3.bf16.msra.mxu1 %v653_v50  ;;  %702 = vmatpush3.bf16.msra.mxu0 %v701_v54 }
  0x35   :  { %655 = vmatprep.subr.bf16.mxu1 %v802_v2  ;;  %703 = vmatprep.subr.bf16.mxu0 %v802_v2 }
  0x95   :  { %v53_v60 = vpop.permute.xlu0 %52  ;;  %v31_v41 = vpop.permute.xlu1 %30 }
  0x96   :  { %vm54_vm1 = vcmp.eq.s32.totalorder %v861_v58, %v53_v60  ;;  %vm32_vm3 = vcmp.eq.s32.totalorder %v861_v58, %v31_v41 }
  0x97   :  { %524 = vmatmul.mubr.msk.f32.vlgmr.msra.gmra.mrb[0].mxu1 %vm54_vm1, %v807_v1 }
  0x98   :  { %657 = vmatpush3.bf16.msra.mxu1 %v656_v59  ;;  %558 = vmatprep.mubr.msk.f32.mxu1 %vm803_vm0, %v804_v11 }
  0x99   :  { %658 = vmatprep.subr.bf16.mxu1 %v802_v2 }
  0x9a   :  { %v215_v7 = vpop.permute.xlu0 %214  ;;  %v308_v46 = vpop.permute.xlu1 %307 }
  0x9b   :  { %vm216_vm2 = vcmp.eq.s32.totalorder %v861_v58, %v215_v7  ;;  %vm309_vm4 = vcmp.eq.s32.totalorder %v861_v58, %v308_v46 }
  0x9c   :  { %660 = vmatpush3.bf16.msra.mxu1 %v659_v3  ;;  %594 = vmatmul.mubr.msk.f32.vlgmr.msra.gmra.mrb[0].mxu0 %vm216_vm2, %v807_v1 }
  0x9d   :  { %705 = vmatpush3.bf16.msra.mxu0 %v704_v4  ;;  %661 = vmatprep.subr.bf16.mxu1 %v802_v2 }
  0x9e   :  { %706 = vmatprep.subr.bf16.mxu0 %v802_v2  ;;  %628 = vmatprep.mubr.msk.f32.mxu0 %vm803_vm0, %v804_v11  ;;  %v46_v11 = vld [vmem:[#allocation2 + $0x58] sm:$0xff] }
  0x9f   :  { %v671_v28 = vpack.c.bf16 %v46_v11, %v45_v25 }
  0xa0   :  { %663 = vmatpush3.bf16.msra.mxu1 %v662_v10 }
  0xa1   :  { %708 = vmatpush3.bf16.msra.mxu0 %v707_v12  ;;  %664 = vmatprep.subr.bf16.mxu1 %v802_v2 }
  0xa2   :  { %709 = vmatprep.subr.bf16.mxu0 %v802_v2 }
  0xa4   :  { %666 = vmatpush3.bf16.msra.mxu1 %v665_v17 }
  0xa5   :  { %711 = vmatpush3.bf16.msra.mxu0 %v710_v18  ;;  %667 = vmatprep.subr.bf16.mxu1 %v802_v2 }
  0xa6   :  { %712 = vmatprep.subr.bf16.mxu0 %v802_v2 }
  0xa8   :  { %669 = vmatpush3.bf16.msra.mxu1 %v668_v23 }
  0xa9   :  { %714 = vmatpush3.bf16.msra.mxu0 %v713_v24  ;;  %670 = vmatprep.subr.bf16.mxu1 %v802_v2 }
  0xaa   :  { %715 = vmatprep.subr.bf16.mxu0 %v802_v2 }
  0xac   :  { %672 = vmatpush3.bf16.msra.mxu1 %v671_v28 }
  0xad   :  { %717 = vmatpush3.bf16.msra.mxu0 %v716_v29  ;;  %673 = vmatprep.subr.bf16.mxu1 %v802_v2 }
  0xae   :  { %718 = vmatprep.subr.bf16.mxu0 %v802_v2 }
  0xb0   :  { %675 = vmatpush3.bf16.msra.mxu1 %v674_v34 }
  0xb1   :  { %720 = vmatpush3.bf16.msra.mxu0 %v719_v35  ;;  %676 = vmatprep.subr.bf16.mxu1 %v802_v2 }
  0xb2   :  { %721 = vmatprep.subr.bf16.mxu0 %v802_v2 }
  0xb4   :  { %678 = vmatpush3.bf16.msra.mxu1 %v677_v40 }
  0xb5   :  { %723 = vmatpush3.bf16.msra.mxu0 %v722_v42 }
  0xb6   :  { %724 = vmatprep.subr.bf16.mxu0 %v802_v2 }
  0xb7   :  { %559 = vmatmul.mubr.msk.f32.vlgmr.msra.gmra.mrb[0].mxu1 %vm32_vm3, %v807_v1 }
  0xb9   :  { %726 = vmatpush3.bf16.msra.mxu0 %v725_v45 }
  0xbc   :  { %629 = vmatmul.mubr.msk.f32.vlgmr.msra.gmra.mrb[0].mxu0 %vm309_vm4, %v807_v1 }
 0x18a   :  { %v209_v47 = vpop.f32.mrb[0].mxu1 }
 0x18b   :  { %v560_v48 = vpop.f32.mrb[1].mxu1 }
 0x18f   :  { %v394_v49 = vpop.f32.mrb[0].mxu0 }
 0x190   :  { %v727_v50 = vadd.f32 %v394_v49, %v209_v47  ;;  %v630_v51 = vpop.f32.mrb[1].mxu0 }
 0x192   :  { %399 = vst [vmem:[#allocation5] sm:$0xff] %v727_v50 }
 0x193   :  { %782 = shalt.err (!%p779_p12)
}
 0x194   :  { %s783_s28 = scalar_lea.hbm %s903_s2, 128 }
 0x195   :  { %p784_p13 = scmp.ne.s32.totalorder %s903_s2, %s783_s28  ;;  %p787_p0 = scmp.lt.u32.totalorder %s783_s28, %s903_s2 }
 0x197   :  { %p789_p1 = pnand %p787_p0, %p784_p13 }
 0x199   :  { %792 = shalt.err (!%p789_p1)
}
 0x19a   :  { %409 = dma.vmem_to_hbm [thread:$0]  %s407_s1, 128, %s903_s2, [#allocation4]  }
 0x19b   :  { %795 = dma.done.wait [#allocation4], 128  }
 0x19c   :  { %796 = vsyncadd [#allocation4], 4294967168 }
 0x19d   :  { %413 = vsyncpa [#allocation3], 1 }
 0x19e   :  { %414 = vsyncpa [#allocation4], 1 }

// kernel: tpu_custom_call.1
= control target key start
LH: loop header
LB: loop body
LE: loop exit
PB: predicated region body
PF: predicated region fallthrough
CT: control target
= control target key end

     0   :  { %7 = vsyncpa [#allocation3], 0  ;;  %s901_s0 = inlined_call_operand.vmem [shape: s32[8,4], index: 0, kind: input, shape index: {}]   ;;  %s902_s1 = inlined_call_operand.hbm [shape: f32[512,128], index: 1, kind: input, shape index: {}]   ;;  %s903_s2 = inlined_call_operand.hbm [shape: f32[8,128], index: 2, kind: output, shape index: {}]  }
   0x1   :  { %8 = vsyncpa [#allocation4], 0  ;;  %s797_s9 = smov [#allocation2]   ;;  %s749_s13 = scalar_lea.hbm %s902_s1, 8192 }
   0x2   :  { %s16_s10 = sshll.u32 %s797_s9, 4  ;;  %p750_p0 = scmp.ne.s32.totalorder %s902_s1, %s749_s13  ;;  %s17_s10 = int_to_ptr.vmem [resolvable:$true] %s16_s10 }
   0x3   :  { %p753_p1 = scmp.lt.u32.totalorder %s749_s13, %s902_s1 }
   0x5   :  { %p755_p2 = pnand %p753_p1, %p750_p0 }
   0x7   :  { %758 = shalt.err (!%p755_p2)
}
   0x8   :  { %s759_s18 = scalar_lea.vmem %s17_s10, 8192  ;;  %p764_p4 = scmp.lt.s32.totalorder %s17_s10, %s17_s10 }
   0x9   :  { %p760_p3 = scmp.ne.s32.totalorder %s17_s10, %s759_s18  ;;  %p765_p5 = scmp.lt.s32.totalorder %s759_s18, %s759_s18 }
   0xb   :  { %p766_p6 = por %p765_p5, %p764_p4 }
   0xd   :  { %p767_p7 = pnand %p766_p6, %p760_p3 }
   0xf   :  { %770 = shalt.err (!%p767_p7)
}
  0x10   :  { %s798_s19 = smov 128   ;;  %s799_s20 = smov 8  }
  0x11   :  { %22 = dma.hbm_to_vmem [thread:$0]  %s902_s1, 8192, %s17_s10, [#allocation3], %s798_s19, %s798_s19, %s799_s20  }
  0x12   :  { %793 = dma.done.wait [#allocation3], 8192  }
  0x13   :  { %794 = vsyncadd [#allocation3], 4294959104  ;;  %v800_v0 = vmov 1   ;;  %v801_v1 = vmov 0   ;;  %v802_v2 = vmov 0.0|0.0   ;;  %v26_v3 = vld [vmem:[%s901_s0] sm:$0xff]  ;;  %v27_v55 = vlaneseq }
  0x14   :  { %744 = vset.pattern.permute.xlu0 %v800_v0  ;;  %746 = vset.pattern.permute.xlu1 %v801_v1  ;;  %v57_v4 = vld [vmem:[#allocation2 + $0x80] sm:$0xff]  ;;  %v58_v5 = vld [vmem:[#allocation2 + $0x88] sm:$0xff]  ;;  %v59_v7 = vld [vmem:[#allocation2 + $0x90] sm:$0xff]  ;;  %vm803_vm0 = vmmov 0   ;;  %v804_v11 = vmov 0.0   ;;  %v805_v18 = vmov 2  }
  0x15   :  { %631 = vmatprep.subr.bf16.mxu1 %v802_v2  ;;  %679 = vmatprep.subr.bf16.mxu0 %v802_v2  ;;  %v632_v6 = vpack.c.bf16 %v58_v5, %v57_v4  ;;  %v60_v8 = vld [vmem:[#allocation2 + $0x98] sm:$0xff]  ;;  %v219_v9 = vld [vmem:[#allocation2 + $0x100] sm:$0xff]  ;;  %v220_v10 = vld [vmem:[#allocation2 + $0x108] sm:$0xff]  ;;  %v806_v19 = vmov 3   ;;  %v861_v58 = vand.u32 127, %v27_v55  ;;  %v807_v1 = vmov 1.0  }
  0x16   :  { %52 = vperm.xlu0 %744, %v26_v3   ;;  %30 = vperm.xlu1 %746, %v26_v3   ;;  %v635_v12 = vpack.c.bf16 %v60_v8, %v59_v7  ;;  %v680_v13 = vpack.c.bf16 %v220_v10, %v219_v9  ;;  %v61_v14 = vld [vmem:[#allocation2 + $0xa0] sm:$0xff]  ;;  %v62_v15 = vld [vmem:[#allocation2 + $0xa8] sm:$0xff]  ;;  %v221_v16 = vld [vmem:[#allocation2 + $0x110] sm:$0xff]  ;;  %s808_s0 = smov [#allocation5]  }
  0x17   :  { %523 = vmatprep.mubr.msk.f32.mxu1 %vm803_vm0, %v804_v11  ;;  %593 = vmatprep.mubr.msk.f32.mxu0 %vm803_vm0, %v804_v11  ;;  %v222_v17 = vld [vmem:[#allocation2 + $0x118] sm:$0xff]  ;;  %v638_v20 = vpack.c.bf16 %v62_v15, %v61_v14  ;;  %v63_v22 = vld [vmem:[#allocation2 + $0xb0] sm:$0xff]  ;;  %v223_v24 = vld [vmem:[#allocation2 + $0x120] sm:$0xff]  ;;  %s406_s1 = sshll.u32 %s808_s0, 4  ;;  %s407_s1 = int_to_ptr.vmem [resolvable:$true] %s406_s1 }
  0x18   :  { %633 = vmatpush3.bf16.msra.mxu1 %v632_v6  ;;  %681 = vmatpush3.bf16.msra.mxu0 %v680_v13  ;;  %v683_v21 = vpack.c.bf16 %v222_v17, %v221_v16  ;;  %v64_v23 = vld [vmem:[#allocation2 + $0xb8] sm:$0xff]  ;;  %v224_v25 = vld [vmem:[#allocation2 + $0x128] sm:$0xff]  ;;  %v65_v28 = vld [vmem:[#allocation2 + $0xc0] sm:$0xff]  ;;  %s771_s25 = scalar_lea.vmem %s407_s1, 128  ;;  %p776_p9 = scmp.lt.s32.totalorder %s407_s1, %s407_s1 }
  0x19   :  { %634 = vmatprep.subr.bf16.mxu1 %v802_v2  ;;  %682 = vmatprep.subr.bf16.mxu0 %v802_v2  ;;  %v641_v26 = vpack.c.bf16 %v64_v23, %v63_v22  ;;  %v686_v27 = vpack.c.bf16 %v224_v25, %v223_v24  ;;  %v66_v29 = vld [vmem:[#allocation2 + $0xc8] sm:$0xff]  ;;  %v225_v30 = vld [vmem:[#allocation2 + $0x130] sm:$0xff]  ;;  %v226_v31 = vld [vmem:[#allocation2 + $0x138] sm:$0xff]  ;;  %p772_p8 = scmp.ne.s32.totalorder %s407_s1, %s771_s25  ;;  %p777_p10 = scmp.lt.s32.totalorder %s771_s25, %s771_s25 }
  0x1a   :  { %745 = vset.pattern.permute.xlu0 %v805_v18  ;;  %747 = vset.pattern.permute.xlu1 %v806_v19  ;;  %v644_v32 = vpack.c.bf16 %v66_v29, %v65_v28  ;;  %v689_v33 = vpack.c.bf16 %v226_v31, %v225_v30  ;;  %v67_v34 = vld [vmem:[#allocation2 + $0xd0] sm:$0xff]  ;;  %v68_v35 = vld [vmem:[#allocation2 + $0xd8] sm:$0xff]  ;;  %v227_v36 = vld [vmem:[#allocation2 + $0x140] sm:$0xff] }
  0x1b   :  { %214 = vperm.xlu0 %745, %v26_v3   ;;  %307 = vperm.xlu1 %747, %v26_v3   ;;  %v228_v37 = vld [vmem:[#allocation2 + $0x148] sm:$0xff]  ;;  %v647_v38 = vpack.c.bf16 %v68_v35, %v67_v34  ;;  %v69_v40 = vld [vmem:[#allocation2 + $0xe0] sm:$0xff]  ;;  %v229_v42 = vld [vmem:[#allocation2 + $0x150] sm:$0xff]  ;;  %p778_p11 = por %p777_p10, %p776_p9 }
  0x1c   :  { %636 = vmatpush3.bf16.msra.mxu1 %v635_v12  ;;  %684 = vmatpush3.bf16.msra.mxu0 %v683_v21  ;;  %v692_v39 = vpack.c.bf16 %v228_v37, %v227_v36  ;;  %v70_v41 = vld [vmem:[#allocation2 + $0xe8] sm:$0xff]  ;;  %v230_v43 = vld [vmem:[#allocation2 + $0x158] sm:$0xff]  ;;  %v71_v46 = vld [vmem:[#allocation2 + $0xf0] sm:$0xff] }
  0x1d   :  { %637 = vmatprep.subr.bf16.mxu1 %v802_v2  ;;  %685 = vmatprep.subr.bf16.mxu0 %v802_v2  ;;  %v650_v44 = vpack.c.bf16 %v70_v41, %v69_v40  ;;  %v695_v45 = vpack.c.bf16 %v230_v43, %v229_v42  ;;  %v72_v47 = vld [vmem:[#allocation2 + $0xf8] sm:$0xff]  ;;  %v231_v48 = vld [vmem:[#allocation2 + $0x160] sm:$0xff]  ;;  %v232_v49 = vld [vmem:[#allocation2 + $0x168] sm:$0xff]  ;;  %p779_p12 = pnand %p778_p11, %p772_p8 }
  0x1e   :  { %v653_v50 = vpack.c.bf16 %v72_v47, %v71_v46  ;;  %v698_v51 = vpack.c.bf16 %v232_v49, %v231_v48  ;;  %v233_v52 = vld [vmem:[#allocation2 + $0x170] sm:$0xff]  ;;  %v234_v53 = vld [vmem:[#allocation2 + $0x178] sm:$0xff]  ;;  %v35_v56 = vld [vmem:[#allocation2] sm:$0xff] }
  0x1f   :  { %748 = vset.pattern.permute.xlu0 %v806_v19  ;;  %v701_v54 = vpack.c.bf16 %v234_v53, %v233_v52  ;;  %v36_v57 = vld [vmem:[#allocation2 + $0x8] sm:$0xff]  ;;  %v37_v61 = vld [vmem:[#allocation2 + $0x10] sm:$0xff]  ;;  %v38_v62 = vld [vmem:[#allocation2 + $0x18] sm:$0xff] }
  0x20   :  { %639 = vmatpush3.bf16.msra.mxu1 %v638_v20  ;;  %687 = vmatpush3.bf16.msra.mxu0 %v686_v27  ;;  %v656_v59 = vpack.c.bf16 %v36_v57, %v35_v56  ;;  %v312_v63 = vld [vmem:[#allocation2 + $0x180] sm:$0xff]  ;;  %v313_v0 = vld [vmem:[#allocation2 + $0x188] sm:$0xff]  ;;  %v659_v3 = vpack.c.bf16 %v38_v62, %v37_v61  ;;  %v314_v8 = vld [vmem:[#allocation2 + $0x190] sm:$0xff] }
  0x21   :  { %640 = vmatprep.subr.bf16.mxu1 %v802_v2  ;;  %688 = vmatprep.subr.bf16.mxu0 %v802_v2  ;;  %v704_v4 = vpack.c.bf16 %v313_v0, %v312_v63  ;;  %v39_v5 = vld [vmem:[#allocation2 + $0x20] sm:$0xff]  ;;  %v40_v6 = vld [vmem:[#allocation2 + $0x28] sm:$0xff]  ;;  %v315_v9 = vld [vmem:[#allocation2 + $0x198] sm:$0xff] }
  0x22   :  { %v662_v10 = vpack.c.bf16 %v40_v6, %v39_v5  ;;  %v707_v12 = vpack.c.bf16 %v315_v9, %v314_v8  ;;  %v41_v13 = vld [vmem:[#allocation2 + $0x30] sm:$0xff]  ;;  %v42_v14 = vld [vmem:[#allocation2 + $0x38] sm:$0xff]  ;;  %v316_v15 = vld [vmem:[#allocation2 + $0x1a0] sm:$0xff] }
  0x23   :  { %v317_v16 = vld [vmem:[#allocation2 + $0x1a8] sm:$0xff]  ;;  %v665_v17 = vpack.c.bf16 %v42_v14, %v41_v13  ;;  %v43_v19 = vld [vmem:[#allocation2 + $0x40] sm:$0xff]  ;;  %v318_v21 = vld [vmem:[#allocation2 + $0x1b0] sm:$0xff] }
  0x24   :  { %642 = vmatpush3.bf16.msra.mxu1 %v641_v26  ;;  %690 = vmatpush3.bf16.msra.mxu0 %v689_v33  ;;  %v710_v18 = vpack.c.bf16 %v317_v16, %v316_v15  ;;  %v44_v20 = vld [vmem:[#allocation2 + $0x48] sm:$0xff]  ;;  %v319_v22 = vld [vmem:[#allocation2 + $0x1b8] sm:$0xff]  ;;  %v45_v25 = vld [vmem:[#allocation2 + $0x50] sm:$0xff] }
  0x25   :  { %643 = vmatprep.subr.bf16.mxu1 %v802_v2  ;;  %691 = vmatprep.subr.bf16.mxu0 %v802_v2  ;;  %v668_v23 = vpack.c.bf16 %v44_v20, %v43_v19  ;;  %v713_v24 = vpack.c.bf16 %v319_v22, %v318_v21  ;;  %v320_v26 = vld [vmem:[#allocation2 + $0x1c0] sm:$0xff]  ;;  %v321_v27 = vld [vmem:[#allocation2 + $0x1c8] sm:$0xff]  ;;  %v323_v33 = vld [vmem:[#allocation2 + $0x1d8] sm:$0xff] }
  0x26   :  { %v716_v29 = vpack.c.bf16 %v321_v27, %v320_v26  ;;  %v47_v30 = vld [vmem:[#allocation2 + $0x60] sm:$0xff]  ;;  %v48_v31 = vld [vmem:[#allocation2 + $0x68] sm:$0xff]  ;;  %v49_v36 = vld [vmem:[#allocation2 + $0x70] sm:$0xff] }
  0x27   :  { %v674_v34 = vpack.c.bf16 %v48_v31, %v47_v30  ;;  %v50_v37 = vld [vmem:[#allocation2 + $0x78] sm:$0xff]  ;;  %v326_v43 = vld [vmem:[#allocation2 + $0x1f0] sm:$0xff] }
  0x28   :  { %645 = vmatpush3.bf16.msra.mxu1 %v644_v32  ;;  %693 = vmatpush3.bf16.msra.mxu0 %v692_v39  ;;  %v322_v32 = vld [vmem:[#allocation2 + $0x1d0] sm:$0xff]  ;;  %v325_v39 = vld [vmem:[#allocation2 + $0x1e8] sm:$0xff]  ;;  %v677_v40 = vpack.c.bf16 %v50_v37, %v49_v36 }
  0x29   :  { %646 = vmatprep.subr.bf16.mxu1 %v802_v2  ;;  %694 = vmatprep.subr.bf16.mxu0 %v802_v2  ;;  %v719_v35 = vpack.c.bf16 %v323_v33, %v322_v32 }
  0x2c   :  { %648 = vmatpush3.bf16.msra.mxu1 %v647_v38  ;;  %696 = vmatpush3.bf16.msra.mxu0 %v695_v45  ;;  %v324_v38 = vld [vmem:[#allocation2 + $0x1e0] sm:$0xff] }
  0x2d   :  { %649 = vmatprep.subr.bf16.mxu1 %v802_v2  ;;  %697 = vmatprep.subr.bf16.mxu0 %v802_v2  ;;  %v722_v42 = vpack.c.bf16 %v325_v39, %v324_v38 }
  0x30   :  { %651 = vmatpush3.bf16.msra.mxu1 %v650_v44  ;;  %699 = vmatpush3.bf16.msra.mxu0 %v698_v51  ;;  %v327_v44 = vld [vmem:[#allocation2 + $0x1f8] sm:$0xff] }
  0x31   :  { %652 = vmatprep.subr.bf16.mxu1 %v802_v2  ;;  %700 = vmatprep.subr.bf16.mxu0 %v802_v2  ;;  %v725_v45 = vpack.c.bf16 %v327_v44, %v326_v43 }
  0x34   :  { %654 = vmatpush3.bf16.msra.mxu1 %v653_v50  ;;  %702 = vmatpush3.bf16.msra.mxu0 %v701_v54 }
  0x35   :  { %655 = vmatprep.subr.bf16.mxu1 %v802_v2  ;;  %703 = vmatprep.subr.bf16.mxu0 %v802_v2 }
  0x95   :  { %v53_v60 = vpop.permute.xlu0 %52  ;;  %v31_v41 = vpop.permute.xlu1 %30 }
  0x96   :  { %vm54_vm1 = vcmp.eq.s32.totalorder %v861_v58, %v53_v60  ;;  %vm32_vm3 = vcmp.eq.s32.totalorder %v861_v58, %v31_v41 }
  0x97   :  { %524 = vmatmul.mubr.msk.f32.vlgmr.msra.gmra.mrb[0].mxu1 %vm54_vm1, %v807_v1 }
  0x98   :  { %657 = vmatpush3.bf16.msra.mxu1 %v656_v59  ;;  %558 = vmatprep.mubr.msk.f32.mxu1 %vm803_vm0, %v804_v11 }
  0x99   :  { %658 = vmatprep.subr.bf16.mxu1 %v802_v2 }
  0x9a   :  { %v215_v7 = vpop.permute.xlu0 %214  ;;  %v308_v46 = vpop.permute.xlu1 %307 }
  0x9b   :  { %vm216_vm2 = vcmp.eq.s32.totalorder %v861_v58, %v215_v7  ;;  %vm309_vm4 = vcmp.eq.s32.totalorder %v861_v58, %v308_v46 }
  0x9c   :  { %660 = vmatpush3.bf16.msra.mxu1 %v659_v3  ;;  %594 = vmatmul.mubr.msk.f32.vlgmr.msra.gmra.mrb[0].mxu0 %vm216_vm2, %v807_v1 }
  0x9d   :  { %705 = vmatpush3.bf16.msra.mxu0 %v704_v4  ;;  %661 = vmatprep.subr.bf16.mxu1 %v802_v2 }
  0x9e   :  { %706 = vmatprep.subr.bf16.mxu0 %v802_v2  ;;  %628 = vmatprep.mubr.msk.f32.mxu0 %vm803_vm0, %v804_v11  ;;  %v46_v11 = vld [vmem:[#allocation2 + $0x58] sm:$0xff] }
  0x9f   :  { %v671_v28 = vpack.c.bf16 %v46_v11, %v45_v25 }
  0xa0   :  { %663 = vmatpush3.bf16.msra.mxu1 %v662_v10 }
  0xa1   :  { %708 = vmatpush3.bf16.msra.mxu0 %v707_v12  ;;  %664 = vmatprep.subr.bf16.mxu1 %v802_v2 }
  0xa2   :  { %709 = vmatprep.subr.bf16.mxu0 %v802_v2 }
  0xa4   :  { %666 = vmatpush3.bf16.msra.mxu1 %v665_v17 }
  0xa5   :  { %711 = vmatpush3.bf16.msra.mxu0 %v710_v18  ;;  %667 = vmatprep.subr.bf16.mxu1 %v802_v2 }
  0xa6   :  { %712 = vmatprep.subr.bf16.mxu0 %v802_v2 }
  0xa8   :  { %669 = vmatpush3.bf16.msra.mxu1 %v668_v23 }
  0xa9   :  { %714 = vmatpush3.bf16.msra.mxu0 %v713_v24  ;;  %670 = vmatprep.subr.bf16.mxu1 %v802_v2 }
  0xaa   :  { %715 = vmatprep.subr.bf16.mxu0 %v802_v2 }
  0xac   :  { %672 = vmatpush3.bf16.msra.mxu1 %v671_v28 }
  0xad   :  { %717 = vmatpush3.bf16.msra.mxu0 %v716_v29  ;;  %673 = vmatprep.subr.bf16.mxu1 %v802_v2 }
  0xae   :  { %718 = vmatprep.subr.bf16.mxu0 %v802_v2 }
  0xb0   :  { %675 = vmatpush3.bf16.msra.mxu1 %v674_v34 }
  0xb1   :  { %720 = vmatpush3.bf16.msra.mxu0 %v719_v35  ;;  %676 = vmatprep.subr.bf16.mxu1 %v802_v2 }
  0xb2   :  { %721 = vmatprep.subr.bf16.mxu0 %v802_v2 }
  0xb4   :  { %678 = vmatpush3.bf16.msra.mxu1 %v677_v40 }
  0xb5   :  { %723 = vmatpush3.bf16.msra.mxu0 %v722_v42 }
  0xb6   :  { %724 = vmatprep.subr.bf16.mxu0 %v802_v2 }
  0xb7   :  { %559 = vmatmul.mubr.msk.f32.vlgmr.msra.gmra.mrb[0].mxu1 %vm32_vm3, %v807_v1 }
  0xb9   :  { %726 = vmatpush3.bf16.msra.mxu0 %v725_v45 }
  0xbc   :  { %629 = vmatmul.mubr.msk.f32.vlgmr.msra.gmra.mrb[0].mxu0 %vm309_vm4, %v807_v1 }
 0x18a   :  { %v209_v47 = vpop.f32.mrb[0].mxu1 }
 0x18b   :  { %v560_v48 = vpop.f32.mrb[1].mxu1 }
 0x18f   :  { %v394_v49 = vpop.f32.mrb[0].mxu0 }
 0x190   :  { %v727_v50 = vadd.f32 %v394_v49, %v209_v47  ;;  %v630_v51 = vpop.f32.mrb[1].mxu0 }
 0x192   :  { %399 = vst [vmem:[#allocation5] sm:$0xff] %v727_v50 }
 0x193   :  { %782 = shalt.err (!%p779_p12)
}
 0x194   :  { %s783_s28 = scalar_lea.hbm %s903_s2, 128 }
 0x195   :  { %p784_p13 = scmp.ne.s32.totalorder %s903_s2, %s783_s28  ;;  %p787_p0 = scmp.lt.u32.totalorder %s783_s28, %s903_s2 }
 0x197   :  { %p789_p1 = pnand %p787_p0, %p784_p13 }
 0x199   :  { %792 = shalt.err (!%p789_p1)
}
 0x19a   :  { %409 = dma.vmem_to_hbm [thread:$0]  %s407_s1, 128, %s903_s2, [#allocation4]  }
 0x19b   :  { %795 = dma.done.wait [#allocation4], 128  }
 0x19c   :  { %796 = vsyncadd [#allocation4], 4294967168 }
 0x19d   :  { %413 = vsyncpa [#allocation3], 1 }
 0x19e   :  { %414 = vsyncpa [#allocation4], 1 }

</bundles_post_ra>
